<compile_context>
chip_gen: v5e
topology: v5e:2x2
jax: 0.10.0
libtpu: 0.0.40
codegen_flags: <defaults>
</compile_context>

<pallas_src>
import jax
import jax.numpy as jnp
from jax.experimental import pallas as pl
from jax.experimental.pallas import tpu as pltpu


def _round_up(x, m):
    return ((x + m - 1) // m) * m


def _supermlp_kernel(x_ref, w1_ref, b1_ref, w2_ref, b2_ref, o_ref):
    # x_ref:  (TN, Cin)        bf16 tile of sampled patch rows
    # w1_ref: (Cin, CoutP)     bf16 (transposed, zero-padded to CoutP)
    # b1_ref: (1, CoutP)       f32
    # w2_ref: (CoutP, CoutP)   bf16
    # b2_ref: (1, CoutP)       f32
    # o_ref:  (TN, CoutP)      f32
    x = x_ref[...]

    # mlp[0]: SuperLinear(in_channels, out_channels) -> x @ W1.T + b1  (MXU, f32 acc)
    h = jnp.dot(x, w1_ref[...], preferred_element_type=jnp.float32) + b1_ref[...]
    # mlp[1]: ReLU, then back to bf16 so the second matmul also runs at MXU bf16 rate.
    h = jnp.maximum(h, 0.0).astype(w2_ref.dtype)
    # mlp[2]: SuperLinear(out_channels, out_channels) -> h @ W2.T + b2
    y = jnp.dot(h, w2_ref[...], preferred_element_type=jnp.float32) + b2_ref[...]

    # l2norm (Normalize, power=2): y / (sqrt(sum(y^2, dim=1, keepdim)) + 1e-7).
    # Padded channels are exactly zero, so they do not perturb the norm.
    # Lane reduce goes to the XLU; reciprocal goes to the EUP slot (nearly free).
    norm = jnp.sqrt(jnp.sum(y * y, axis=1, keepdims=True))
    o_ref[...] = (y * pl.reciprocal(norm + 1e-7, approx=True)).astype(o_ref.dtype)


def _pick_tile_n(n_rows, c_in, c_out_p, x_itemsize,
                 vmem_budget_bytes=12 * 1024 * 1024, tile_cap=512):
    """Largest row tile whose double-buffered x/out tiles + f32 temporaries fit
    a conservative budget (stays below the default scoped-VMEM limit on
    v5e/v6e/v7x, so no vmem_limit_bytes override is needed)."""
    # per-row bytes: 2x-buffered x tile + 2x-buffered f32 out tile + f32 h/y temps.
    per_row = 2 * c_in * x_itemsize + 2 * c_out_p * 4 + 2 * c_out_p * 4
    tile = min(tile_cap, _round_up(n_rows, 8))
    while tile > 8 and tile * per_row > vmem_budget_bytes:
        tile = max(8, _round_up(tile // 2, 8))
    # If the whole problem fits in one step but is big enough, split into two
    # steps so the "parallel" grid axis can feed both v7x TensorCores while
    # keeping M >= 128 per step for the MXU.
    if _round_up(n_rows, tile) == tile and n_rows >= 256:
        tile = _round_up((n_rows + 1) // 2, 8)
    return tile


def _run_mlp_l2norm(x_sample, w1_t, b1, w2_t, b2):
    """x_sample: (N, Cin) -> (N, CoutP), L2-normalized per row."""
    n, c_in = x_sample.shape
    c_out_p = w1_t.shape[1]
    tile_n = _pick_tile_n(n, c_in, c_out_p, x_sample.dtype.itemsize)
    n_pad = _round_up(n, tile_n)
    if n_pad != n:
        x_sample = jnp.pad(x_sample, ((0, n_pad - n), (0, 0)))
    grid = (n_pad // tile_n,)

    out = pl.pallas_call(
        _supermlp_kernel,
        out_shape=jax.ShapeDtypeStruct((n_pad, c_out_p), jnp.float32),
        grid_spec=pltpu.PrefetchScalarGridSpec(
            num_scalar_prefetch=0,
            grid=grid,
            in_specs=[
                pl.BlockSpec((tile_n, c_in), lambda i: (i, 0)),
                # Weights/biases have constant index_maps, so the pipeline only
                # DMAs them once across the whole grid.
                # TODO(synk): pipeline_mode=pl.Buffered(1) on these invariant
                # specs would also halve their VMEM footprint; left at the
                # default buffering for portability (they are small here).
                pl.BlockSpec((c_in, c_out_p), lambda i: (0, 0)),
                pl.BlockSpec((1, c_out_p), lambda i: (0, 0)),
                pl.BlockSpec((c_out_p, c_out_p), lambda i: (0, 0)),
                pl.BlockSpec((1, c_out_p), lambda i: (0, 0)),
            ],
            out_specs=pl.BlockSpec((tile_n, c_out_p), lambda i: (i, 0)),
        ),
        compiler_params=pltpu.CompilerParams(
            dimension_semantics=("parallel",),
        ),
    )(x_sample, w1_t, b1, w2_t, b2)
    return out[:n]


def super_mlp_forward(x, params, num_patches=256, patch_id=None, *,
                      sample_key=None, compute_dtype=jnp.bfloat16):
    """Mirrors SuperMLP.forward.

    x: (B, C, H, W)  (NCHW, as in PyTorch)
    params: dict with w1 (Cout, Cin), b1 (Cout,), w2 (Cout, Cout), b2 (Cout,)
    Returns (x_sample, patch_id).
    """
    B, C, H, W = x.shape

    if num_patches <= 0:
        # TODO(synk): num_patches == 0 path (full feature map, dim-1 normalize,
        # permute back to NCHW) not implemented; kernel covers the sampled path.
        raise NotImplementedError("num_patches == 0 path not implemented")

    if patch_id is None:
        if sample_key is None:
            sample_key = jax.random.PRNGKey(0)
        patch_id = jax.random.permutation(sample_key, H * W)
        patch_id = patch_id[: int(min(num_patches, H * W))]

    # Gather only the sampled spatial positions straight out of NCHW (avoids
    # materializing the full NHWC transpose in HBM), then make channels-last
    # rows: (B, C, P) -> (B, P, C) -> (B*P, C).
    h_idx = patch_id // W
    w_idx = patch_id % W
    x_sample = jnp.transpose(x[:, :, h_idx, w_idx], (0, 2, 1)).reshape(-1, C)
    # TODO(synk): fully fusing this gather into the kernel (scalar-prefetched
    # patch_id + manual row DMA) would remove the remaining HBM round-trip.

    c_out = params["w1"].shape[0]
    c_out_p = _round_up(c_out, 128)  # lane-dense output -> unmasked vector stores

    # SuperLinear slices its weight to the incoming channel count.
    w1 = params["w1"][:, :C]
    # F.linear uses x @ W.T + b -> pass weights transposed (and zero-padded) to
    # the kernel; padded output channels stay exactly zero through both layers.
    w1_t = jnp.pad(jnp.transpose(w1),
                   ((0, 0), (0, c_out_p - c_out))).astype(compute_dtype)
    w2_t = jnp.pad(jnp.transpose(params["w2"]),
                   ((0, c_out_p - c_out), (0, c_out_p - c_out))).astype(compute_dtype)
    b1 = jnp.pad(params["b1"], (0, c_out_p - c_out)).reshape(1, -1).astype(jnp.float32)
    b2 = jnp.pad(params["b2"], (0, c_out_p - c_out)).reshape(1, -1).astype(jnp.float32)

    out = _run_mlp_l2norm(x_sample.astype(compute_dtype), w1_t, b1, w2_t, b2)
    return out[:, :c_out], patch_id


def _reference_forward(x_sample, params, compute_dtype=jnp.float32):
    """Pure-JAX reference of the same math (optionally with bf16 matmul inputs)."""
    w1 = params["w1"].astype(compute_dtype)
    w2 = params["w2"].astype(compute_dtype)
    xs = x_sample.astype(compute_dtype)
    h = jnp.dot(xs, w1.T, preferred_element_type=jnp.float32) + params["b1"]
    h = jnp.maximum(h, 0.0)
    y = (jnp.dot(h.astype(compute_dtype), w2.T, preferred_element_type=jnp.float32)
         + params["b2"])
    norm = jnp.sqrt(jnp.sum(y * y, axis=1, keepdims=True))
    return y / (norm + 1e-7)


def _init_params(key, in_channels, out_channels):
    # Deterministic init mimicking nn.Linear's uniform(-1/sqrt(fan_in), ...) bounds.
    k1, k2, k3, k4 = jax.random.split(key, 4)
    bound1 = 1.0 / jnp.sqrt(in_channels)
    bound2 = 1.0 / jnp.sqrt(out_channels)
    return {
        "w1": jax.random.uniform(k1, (out_channels, in_channels), jnp.float32,
                                 -bound1, bound1),
        "b1": jax.random.uniform(k2, (out_channels,), jnp.float32, -bound1, bound1),
        "w2": jax.random.uniform(k3, (out_channels, out_channels), jnp.float32,
                                 -bound2, bound2),
        "b2": jax.random.uniform(k4, (out_channels,), jnp.float32, -bound2, bound2),
    }


if __name__ == "__main__":
    key = jax.random.PRNGKey(0)
    k_x, k_p, k_id = jax.random.split(key, 3)

    B, C_in, H, W = 2, 4, 16, 16
    C_out = 32
    num_patches = 8

    x = jax.random.normal(k_x, (B, C_in, H, W), jnp.float32)
    params = _init_params(k_p, C_in, C_out)

    out, patch_id = super_mlp_forward(
        x, params, num_patches=num_patches, patch_id=None, sample_key=k_id
    )
    out = jax.block_until_ready(out)

    # Cross-check against pure-JAX references using the original (full
    # transpose + fancy index) gather.
    feat = jnp.transpose(x, (0, 2, 3, 1)).reshape(B, H * W, C_in)
    x_sample = feat[:, patch_id, :].reshape(-1, C_in)
    ref_bf16 = _reference_forward(x_sample, params, jnp.bfloat16)  # same precision
    ref_f32 = _reference_forward(x_sample, params, jnp.float32)    # full precision

    assert out.shape == (B * num_patches, C_out)
    # bf16-matmul reference: only the approx-reciprocal epilogue differs (~1e-3 rel).
    assert jnp.allclose(out, ref_bf16, atol=5e-3, rtol=5e-3)
    # f32 reference: bounded by bf16 input rounding on normalized outputs.
    assert jnp.allclose(out, ref_f32, atol=5e-2, rtol=5e-2)

    print("KERNEL_OK")
</pallas_src>

<mosaic_0001>
module attributes {stable_mosaic.version = 11 : i64} {
  func.func @_supermlp_kernel(%arg0: i32, %arg1: memref<16x4xbf16, #tpu.memory_space<vmem>>, %arg2: memref<4x128xbf16, #tpu.memory_space<vmem>>, %arg3: memref<1x128xf32, #tpu.memory_space<vmem>>, %arg4: memref<128x128xbf16, #tpu.memory_space<vmem>>, %arg5: memref<1x128xf32, #tpu.memory_space<vmem>>, %arg6: memref<16x128xf32, #tpu.memory_space<vmem>>) attributes {dimension_semantics = [#tpu.dimension_semantics<parallel>], iteration_bounds = array<i64: 1>, scalar_prefetch = 0 : i64, scratch_operands = 0 : i64, tpu.core_type = #tpu.core_type<tc>, window_params = [{transform_indices = @transform_0, window_bounds = array<i64: 16, 4>}, {pipeline_mode = #tpu.pipeline_mode<synchronous>, transform_indices = @transform_1, window_bounds = array<i64: 4, 128>}, {pipeline_mode = #tpu.pipeline_mode<synchronous>, transform_indices = @transform_2, window_bounds = array<i64: 1, 128>}, {pipeline_mode = #tpu.pipeline_mode<synchronous>, transform_indices = @transform_3, window_bounds = array<i64: 128, 128>}, {pipeline_mode = #tpu.pipeline_mode<synchronous>, transform_indices = @transform_4, window_bounds = array<i64: 1, 128>}, {transform_indices = @transform_5, window_bounds = array<i64: 16, 128>}]} {
    %c0 = arith.constant 0 : index
    %c0_0 = arith.constant 0 : index
    %0 = vector.load %arg1[%c0, %c0_0] : memref<16x4xbf16, #tpu.memory_space<vmem>>, vector<16x4xbf16>
    %c0_1 = arith.constant 0 : index
    %c0_2 = arith.constant 0 : index
    %1 = vector.load %arg2[%c0_1, %c0_2] : memref<4x128xbf16, #tpu.memory_space<vmem>>, vector<4x128xbf16>
    %cst = arith.constant dense<0.000000e+00> : vector<16x128xf32>
    %2 = tpu.matmul %0, %1, %cst {dimension_numbers = #tpu.dot_dimension_numbers<[1], [0], [0], [1], [0, 0, 1, 1], [], []>} : vector<16x4xbf16>, vector<4x128xbf16>, vector<16x128xf32> -> vector<16x128xf32>
    %c0_3 = arith.constant 0 : index
    %c0_4 = arith.constant 0 : index
    %3 = vector.load %arg3[%c0_3, %c0_4] : memref<1x128xf32, #tpu.memory_space<vmem>>, vector<1x128xf32>
    %4 = vector.broadcast %3 : vector<1x128xf32> to vector<16x128xf32>
    %5 = arith.addf %2, %4 : vector<16x128xf32>
    %cst_5 = arith.constant 0.000000e+00 : f32
    %6 = vector.broadcast %cst_5 : f32 to vector<16x128xf32>
    %7 = arith.maximumf %5, %6 : vector<16x128xf32>
    %8 = arith.truncf %7 : vector<16x128xf32> to vector<16x128xbf16>
    %c0_6 = arith.constant 0 : index
    %c0_7 = arith.constant 0 : index
    %9 = vector.load %arg4[%c0_6, %c0_7] : memref<128x128xbf16, #tpu.memory_space<vmem>>, vector<128x128xbf16>
    %cst_8 = arith.constant dense<0.000000e+00> : vector<16x128xf32>
    %10 = tpu.matmul %8, %9, %cst_8 {dimension_numbers = #tpu.dot_dimension_numbers<[1], [0], [0], [1], [0, 0, 1, 1], [], []>} : vector<16x128xbf16>, vector<128x128xbf16>, vector<16x128xf32> -> vector<16x128xf32>
    %c0_9 = arith.constant 0 : index
    %c0_10 = arith.constant 0 : index
    %11 = vector.load %arg5[%c0_9, %c0_10] : memref<1x128xf32, #tpu.memory_space<vmem>>, vector<1x128xf32>
    %12 = vector.broadcast %11 : vector<1x128xf32> to vector<16x128xf32>
    %13 = arith.addf %10, %12 : vector<16x128xf32>
    %14 = arith.mulf %13, %13 : vector<16x128xf32>
    %cst_11 = arith.constant dense<0.000000e+00> : vector<16xf32>
    %15 = vector.multi_reduction <add>, %14, %cst_11 [1] : vector<16x128xf32> to vector<16xf32>
    %16 = vector.shape_cast %15 : vector<16xf32> to vector<16x1xf32>
    %17 = math.sqrt %16 : vector<16x1xf32>
    %cst_12 = arith.constant 1.000000e-07 : f32
    %18 = vector.broadcast %cst_12 : f32 to vector<16x1xf32>
    %19 = arith.addf %17, %18 : vector<16x1xf32>
    %20 = tpu.reciprocal %19 {approx = true} : vector<16x1xf32> -> vector<16x1xf32>
    %21 = vector.broadcast %20 : vector<16x1xf32> to vector<16x128xf32>
    %22 = arith.mulf %13, %21 : vector<16x128xf32>
    %c0_13 = arith.constant 0 : index
    %c0_14 = arith.constant 0 : index
    %23 = vector.load %arg6[%c0_13, %c0_14] : memref<16x128xf32, #tpu.memory_space<vmem>>, vector<16x128xf32>
    tpu.vector_store %arg6[%c0_13, %c0_14], %22 {strides = array<i32>} : memref<16x128xf32, #tpu.memory_space<vmem>>, vector<16x128xf32>,
    return
  }
  func.func @transform_0(%arg0: i32) -> (i32, i32) {
    %c0_i32 = arith.constant 0 : i32
    %c0_i32_0 = arith.constant 0 : i32
    return %arg0, %c0_i32 : i32, i32
  }
  func.func @transform_1(%arg0: i32) -> (i32, i32) {
    %c0_i32 = arith.constant 0 : i32
    %c0_i32_0 = arith.constant 0 : i32
    %c0_i32_1 = arith.constant 0 : i32
    return %c0_i32, %c0_i32_0 : i32, i32
  }
  func.func @transform_2(%arg0: i32) -> (i32, i32) {
    %c0_i32 = arith.constant 0 : i32
    %c0_i32_0 = arith.constant 0 : i32
    %c0_i32_1 = arith.constant 0 : i32
    return %c0_i32, %c0_i32_0 : i32, i32
  }
  func.func @transform_3(%arg0: i32) -> (i32, i32) {
    %c0_i32 = arith.constant 0 : i32
    %c0_i32_0 = arith.constant 0 : i32
    %c0_i32_1 = arith.constant 0 : i32
    return %c0_i32, %c0_i32_0 : i32, i32
  }
  func.func @transform_4(%arg0: i32) -> (i32, i32) {
    %c0_i32 = arith.constant 0 : i32
    %c0_i32_0 = arith.constant 0 : i32
    %c0_i32_1 = arith.constant 0 : i32
    return %c0_i32, %c0_i32_0 : i32, i32
  }
  func.func @transform_5(%arg0: i32) -> (i32, i32) {
    %c0_i32 = arith.constant 0 : i32
    %c0_i32_0 = arith.constant 0 : i32
    return %arg0, %c0_i32 : i32, i32
  }
}

</mosaic_0001>

<bundles_post_ra>
// kernel: tpu_custom_call.1
= control target key start
LH: loop header
LB: loop body
LE: loop exit
PB: predicated region body
PF: predicated region fallthrough
CT: control target
= control target key end

     0   :  { %10 = vsyncpa [#allocation3], 0  ;;  %s382_s0 = inlined_call_operand.vmem [shape: bf16[16,4], index: 0, kind: input, shape index: {}]   ;;  %s383_s1 = inlined_call_operand.vmem [shape: bf16[4,128], index: 1, kind: input, shape index: {}]   ;;  %s384_s2 = inlined_call_operand.vmem [shape: f32[1,128], index: 2, kind: input, shape index: {}]   ;;  %s385_s3 = inlined_call_operand.hbm [shape: bf16[128,128], index: 3, kind: input, shape index: {}]   ;;  %s386_s4 = inlined_call_operand.vmem [shape: f32[1,128], index: 4, kind: input, shape index: {}]   ;;  %s387_s5 = inlined_call_operand.hbm [shape: f32[16,128], index: 5, kind: output, shape index: {}]  }
   0x1   :  { %11 = vsyncpa [#allocation4], 0  ;;  %s22_s20 = sshll.u32 %s385_s3, 4  ;;  %s328_s21 = smov [#allocation2]   ;;  %s23_s20 = int_to_ptr.hbm [resolvable:$true] %s22_s20 }
   0x2   :  { %s24_s22 = sshll.u32 %s328_s21, 4  ;;  %s329_s23 = smov 64   ;;  %s25_s22 = int_to_ptr.vmem [resolvable:$true] %s24_s22 }
   0x3   :  { %s330_s24 = smov 4  }
   0x4   :  { %30 = dma.hbm_to_vmem [thread:$0]  %s23_s20, 1024, %s25_s22, [#allocation3], %s329_s23, %s329_s23, %s330_s24  }
   0x5   :  { %324 = dma.done.wait [#allocation3], 1024  }
   0x6   :  { %325 = vsyncadd [#allocation3], 4294966272  ;;  %vm54_vm0 = vcmask 1041408   ;;  %v40_v0 = vld [vmem:[%s383_s1] sm:$0x3]  ;;  %v259_v1 = vld [vmem:[#allocation2 + $0x38] sm:$0xff] }
   0x7   :  { %v56_v2 = vsel %vm54_vm0, %v40_v0, 0  ;;  %v251_v3 = vld [vmem:[%s382_s0] sm:$0xff]  ;;  %vm50_vm1 = vcmask 31744   ;;  %143 = vmatpush.bf16.msra.mxu1 %v259_v1  ;;  %v258_v4 = vld [vmem:[#allocation2 + $0x30] sm:$0xff]  ;;  %v257_v5 = vld [vmem:[#allocation2 + $0x28] sm:$0xff]  ;;  %s201_s7 = sshll.u32 %s387_s5, 4  ;;  %s202_s7 = int_to_ptr.hbm [resolvable:$true] %s201_s7 }
   0x8   :  { %65 = vmatpush.bf16.msra.mxu0 %v56_v2  ;;  %v256_v6 = vld [vmem:[#allocation2 + $0x20] sm:$0xff]  ;;  %v255_v7 = vld [vmem:[#allocation2 + $0x18] sm:$0xff]  ;;  %v254_v8 = vld [vmem:[#allocation2 + $0x10] sm:$0xff]  ;;  %s332_s8 = smov 128   ;;  %s333_s9 = smov 8  }
   0x9   :  { %v253_v9 = vld [vmem:[#allocation2 + $0x8] sm:$0xff]  ;;  %v252_v10 = vld [vmem:[#allocation2] sm:$0xff] }
   0xa   :  { %v266_v12 = vld [vmem:[%s384_s2] ss:$0 sm:$0xff]  ;;  %s331_s2 = smov [#allocation5]  }
   0xb   :  { %218 = vmatmul.msk.bf16.vlgmr.msra.gmra.mxu0 %vm50_vm1, %v251_v3  ;;  %144 = vmatpush.bf16.msra.mxu1 %v258_v4  ;;  %v267_v19 = vld [vmem:[%s386_s4] ss:$0 sm:$0xff]  ;;  %s199_s4 = sshll.u32 %s331_s2, 4  ;;  %s200_s4 = int_to_ptr.vmem [resolvable:$true] %s199_s4 }
   0xf   :  { %145 = vmatpush.bf16.msra.mxu1 %v257_v5 }
  0x13   :  { %146 = vmatpush.bf16.msra.mxu1 %v256_v6 }
  0x17   :  { %147 = vmatpush.bf16.msra.mxu1 %v255_v7 }
  0x1b   :  { %148 = vmatpush.bf16.msra.mxu1 %v254_v8 }
  0x1f   :  { %149 = vmatpush.bf16.msra.mxu1 %v253_v9 }
  0x23   :  { %150 = vmatpush.bf16.msra.mxu1 %v252_v10 }
  0x88   :  { %v67_v11 = vpop.f32.mrf.mxu0 }
  0x89   :  { %v68_v13 = vadd.f32 %v266_v12, %v67_v11 }
  0x8b   :  { %v72_v16 = vmax.f32 %v68_v13, 0.0 }
  0x90   :  { %v69_v14 = vpop.f32.mrf.mxu0 }
  0x91   :  { %v70_v15 = vadd.f32 %v266_v12, %v69_v14 }
  0x93   :  { %v73_v17 = vmax.f32 %v70_v15, 0.0 }
  0x95   :  { %v74_v18 = vpack.c.bf16 %v73_v17, %v72_v16 }
  0x97   :  { %151 = vmatmul.bf16.vlgmr.msra.gmra.mxu1 %v74_v18 }
 0x114   :  { %v152_v20 = vpop.f32.mrf.mxu1 }
 0x115   :  { %v153_v21 = vadd.f32 %v267_v19, %v152_v20 }
 0x117   :  { %v157_v22 = vmul.f32 %v153_v21, %v153_v21 }
 0x119   :  { %159 = vadd.xlane.f32.xlu0 %v157_v22 }
 0x11c   :  { %v154_v23 = vpop.f32.mrf.mxu1 }
 0x11d   :  { %v155_v24 = vadd.f32 %v267_v19, %v154_v23 }
 0x11f   :  { %v158_v25 = vmul.f32 %v155_v24, %v155_v24 }
 0x121   :  { %161 = vadd.xlane.f32.xlu0 %v158_v25 }
 0x18c   :  { %v160_v26 = vpop.xlane.xlu0 %159 }
 0x18d   :  { %268 = vrsqrt.f32 %v160_v26  ;;  %vm170_vm2 = vcmp.eq.f32.partialorder %v160_v26, inf  ;;  %v173_v38 = vand.u32 2147483648, %v160_v26  ;;  %vm172_vm3 = vcmp.eq.f32.partialorder %v160_v26, 0.0 }
 0x193   :  { %v269_v27 = vpop.eup %268 }
 0x194   :  { %v164_v28 = vmul.f32 %v269_v27, %v160_v26  ;;  %v162_v29 = vpop.xlane.xlu0 %161 }
 0x195   :  { %270 = vrsqrt.f32 %v162_v29  ;;  %vm182_vm4 = vcmp.eq.f32.partialorder %v162_v29, inf  ;;  %v185_v46 = vand.u32 2147483648, %v162_v29  ;;  %vm184_vm5 = vcmp.eq.f32.partialorder %v162_v29, 0.0 }
 0x196   :  { %v165_v30 = vmul.f32 %v269_v27, %v164_v28 }
 0x198   :  { %v166_v31 = vmul.f32 0.5, %v165_v30 }
 0x19a   :  { %v167_v32 = vsub.f32 1.5, %v166_v31 }
 0x19b   :  { %v271_v33 = vpop.eup %270 }
 0x19c   :  { %v168_v34 = vmul.f32 %v269_v27, %v167_v32  ;;  %v176_v35 = vmul.f32 %v271_v33, %v162_v29 }
 0x19e   :  { %v169_v36 = vmul.f32 %v168_v34, %v160_v26  ;;  %v177_v37 = vmul.f32 %v271_v33, %v176_v35 }
 0x1a0   :  { %v171_v39 = vsel %vm170_vm2, %v160_v26, %v169_v36  ;;  %v178_v40 = vmul.f32 0.5, %v177_v37 }
 0x1a1   :  { %v174_v41 = vsel %vm172_vm3, %v173_v38, %v171_v39 }
 0x1a2   :  { %v187_v42 = vadd.f32 1e-07, %v174_v41  ;;  %v179_v43 = vsub.f32 1.5, %v178_v40 }
 0x1a4   :  { %272 = vrcp.f32 %v187_v42  ;;  %v180_v44 = vmul.f32 %v271_v33, %v179_v43 }
 0x1a6   :  { %v181_v45 = vmul.f32 %v180_v44, %v162_v29 }
 0x1a8   :  { %v183_v47 = vsel %vm182_vm4, %v162_v29, %v181_v45 }
 0x1a9   :  { %v186_v48 = vsel %vm184_vm5, %v185_v46, %v183_v47 }
 0x1aa   :  { %v273_v49 = vpop.eup %272  ;;  %v188_v50 = vadd.f32 1e-07, %v186_v48 }
 0x1ab   :  { %v191_v51 = vmul.f32 %v273_v49, %v153_v21 }
 0x1ac   :  { %274 = vrcp.f32 %v188_v50 }
 0x1ad   :  { %193 = vst [vmem:[#allocation5] sm:$0xff] %v191_v51 }
 0x1b2   :  { %v275_v52 = vpop.eup %274 }
 0x1b3   :  { %v192_v53 = vmul.f32 %v275_v52, %v155_v24 }
 0x1b5   :  { %194 = vst [vmem:[#allocation5 + $0x8] sm:$0xff] %v192_v53 }
 0x1b6   :  { %207 = dma.vmem_to_hbm [thread:$0]  %s200_s4, 256, %s202_s7, [#allocation4], %s332_s8, %s332_s8, %s333_s9  }
 0x1b7   :  { %326 = dma.done.wait [#allocation4], 256  }
 0x1b8   :  { %327 = vsyncadd [#allocation4], 4294967040 }
 0x1b9   :  { %212 = vsyncpa [#allocation3], 1 }
 0x1ba   :  { %213 = vsyncpa [#allocation4], 1 }

</bundles_post_ra>
